<compile_context>
chip_gen: v7x
topology: tpu7x:2x2x1
jax: 0.10.0
libtpu: 0.0.40
codegen_flags: <defaults>
</compile_context>

<pallas_src>
import jax
import jax.numpy as jnp
from jax import lax
from jax.experimental import pallas as pl
from jax.experimental.pallas import tpu as pltpu

B, N, S = 2, 8, 16        # demo batch, atoms, species
F, H, C = 32, 128, 4      # embedding, hidden width, radial channels
# H=128 exactly fills v5e's 128-wide MXU; it half-fills the 256-wide MXU on
# v6e/v7x -- the synthetic architecture is kept at 128 to match the reference.
KPAD = 256                # first-layer K (5*F=160) zero-padded to an MXU-depth multiple
OUT_LANES = 128           # lane-dense output slab per grid step
ROWS_CAP = 256            # stacked atom rows per tile (VMEM budget for rows^2 temporaries)
W_Q = 0.1                 # static charge coupling
# radial widths are (0.5, 1, 2, 4): geometric, so only one exp is evaluated


def make_kernel(tile_rows):
    def nnp_kernel(arow_ref, acolT_ref, emb_ref, w1_ref, b1_ref, w2_ref,
                   b2_ref, w3_ref, out_ref, gcat_ref):
        data = arow_ref[0]            # [rows, 8] f32: x,y,z,mask,e0,mol_id,atom_id,0
        dataT = acolT_ref[0]          # [8, rows] f32 (same data, per-tile transposed)
        E = emb_ref[0]                # [rows, F] bf16, pad-atom rows zeroed in wrapper

        mask_c = data[:, 3:4]         # [rows, 1]  1.0 real atom, 0.0 padding
        e0_c = data[:, 4:5]           # [rows, 1]  per-atom reference energy
        mol_c = data[:, 5:6]          # [rows, 1]  molecule id within the tile
        aid_c = data[:, 6:7]          # [rows, 1]  atom id within the tile
        mol_r = dataT[5:6, :]         # [1, rows]
        aid_r = dataT[6:7, :]         # [1, rows]

        # ---- pairwise squared distances (2-D broadcasts only) ----
        dx = data[:, 0:1] - dataT[0:1, :]
        dy = data[:, 1:2] - dataT[1:2, :]
        dz = data[:, 2:3] - dataT[2:3, :]
        d2 = dx * dx + dy * dy + dz * dz                       # [rows, rows]

        # pair validity: same molecule, different atom.  Pad atoms contribute
        # nothing as senders (their embedding row is zero) and are masked as
        # receivers by mask_c below -- no [rows, rows] iotas needed.
        pair_w = jnp.where(jnp.logical_and(mol_c == mol_r, aid_c != aid_r),
                           1.0, 0.0)                           # [rows, rows]

        # ---- one EUP exp; other radial channels via VPU squarings ----
        # pair_w is {0,1} so squaring keeps the mask applied.
        p05 = pair_w * jnp.exp(-0.5 * d2)
        p10 = p05 * p05
        p20 = p10 * p10
        p40 = p20 * p20

        # ---- single fused aggregation matmul: [4*rows, rows] @ [rows, F] ----
        stacked = jnp.concatenate([p05, p10, p20, p40],
                                  axis=0).astype(jnp.bfloat16)
        agg = jnp.dot(stacked, E, preferred_element_type=jnp.float32)  # [4*rows, F]

        # ---- first-layer input assembled in a K-padded VMEM scratch ----
        gcat_ref[...] = jnp.zeros_like(gcat_ref)               # pad lanes stay zero
        gcat_ref[:, 0:F] = E.astype(jnp.float32)
        for k in range(C):
            gcat_ref[:, (k + 1) * F:(k + 2) * F] = (
                agg[k * tile_rows:(k + 1) * tile_rows])

        # ---- MLP: bf16 MXU operands, f32 accumulation ----
        h1 = jnp.tanh(jnp.dot(gcat_ref[...].astype(jnp.bfloat16), w1_ref[...],
                              preferred_element_type=jnp.float32) + b1_ref[...])
        h2 = jnp.tanh(jnp.dot(h1.astype(jnp.bfloat16), w2_ref[...],
                              preferred_element_type=jnp.float32) + b2_ref[...])
        # 1-wide last layer: VPU multiply + lane reduce instead of an N=1 matmul
        e_atom = jnp.sum(h2 * w3_ref[...], axis=1, keepdims=True) + e0_c  # [rows, 1]

        # ---- masked per-molecule segment sum -> lane-dense [1, 128] slab ----
        lane = lax.broadcasted_iota(jnp.int32, (tile_rows, OUT_LANES),
                                    1).astype(jnp.float32)
        seg = jnp.where(mol_c == lane, 1.0, 0.0)               # [rows, 128]
        out_ref[0] = jnp.sum((e_atom * mask_c) * seg, axis=0, keepdims=True)

    return nnp_kernel


def init_params(key):
    ks = jax.random.split(key, 5)
    emb = 0.1 * jax.random.normal(ks[0], (S, F), jnp.float32)
    e0 = 0.01 * jax.random.normal(ks[1], (S, 1), jnp.float32)
    w1 = jax.random.normal(ks[2], ((1 + C) * F, H), jnp.float32) / jnp.sqrt((1 + C) * F)
    b1 = jnp.zeros((1, H), jnp.float32)
    w2 = jax.random.normal(ks[3], (H, H), jnp.float32) / jnp.sqrt(H)
    b2 = jnp.zeros((1, H), jnp.float32)
    w3 = jax.random.normal(ks[4], (H, 1), jnp.float32) / jnp.sqrt(H)
    b3 = jnp.zeros((1, 1), jnp.float32)
    return emb, e0, w1, b1, w2, b2, w3, b3


def nnp_forward(species, coords, charges, params):
    """species [B,N] int32, coords [B,N,3] f32, charges [B] f32 -> energies [B] f32."""
    emb, e0, w1, b1, w2, b2, w3, b3 = params
    b, n = species.shape

    # ---- tiling: rows multiple of 8, capped for VMEM, >=2 tiles for v7x's 2 TCs ----
    n_pad = ((n + 7) // 8) * 8
    if n_pad <= ROWS_CAP:
        b_tile = max(1, min(b, ROWS_CAP // n_pad))
    else:
        b_tile = 1
    num_tiles = pl.cdiv(b, b_tile)
    if num_tiles == 1 and b >= 2:          # give both v7x TensorCores work
        b_tile = pl.cdiv(b, 2)
        num_tiles = 2
    bp = num_tiles * b_tile
    tile_rows = b_tile * n_pad
    rows_total = bp * n_pad

    species = jnp.pad(species, ((0, bp - b), (0, n_pad - n)))   # pad -> species 0
    coords = jnp.pad(coords, ((0, bp - b), (0, n_pad - n), (0, 0)))

    # ---- wrapper-side glue: gathers instead of one-hot matmuls, packed atoms ----
    mask = (species != 0).astype(jnp.float32)                          # [bp, n_pad]
    E = jnp.take(emb, species, axis=0) * mask[..., None]               # zero pad rows
    E = E.reshape(num_tiles, tile_rows, F).astype(jnp.bfloat16)
    e0_atom = jnp.take(e0[:, 0], species)                              # [bp, n_pad]
    mol_local = (jnp.arange(bp, dtype=jnp.int32) % b_tile).astype(jnp.float32)
    mol_col = jnp.broadcast_to(mol_local[:, None], (bp, n_pad))
    aid = (jnp.arange(rows_total, dtype=jnp.int32) % tile_rows).astype(jnp.float32)

    xyz = coords.reshape(rows_total, 3).astype(jnp.float32)
    atom_row = jnp.concatenate(
        [xyz,
         mask.reshape(rows_total, 1),
         e0_atom.reshape(rows_total, 1).astype(jnp.float32),
         mol_col.reshape(rows_total, 1),
         aid.reshape(rows_total, 1),
         jnp.zeros((rows_total, 1), jnp.float32)], axis=1)             # [bp*n_pad, 8]
    atom_row = atom_row.reshape(num_tiles, tile_rows, 8)
    atom_colT = jnp.transpose(atom_row, (0, 2, 1))                     # per-tile transpose

    # weights: K padded to 256, MXU operands cast to bf16 (halves DMA too)
    w1p = jnp.pad(w1, ((0, KPAD - w1.shape[0]), (0, 0))).astype(jnp.bfloat16)
    w2b = w2.astype(jnp.bfloat16)
    w3r = w3.reshape(1, H).astype(jnp.float32)

    kernel = make_kernel(tile_rows)

    out = pl.pallas_call(
        kernel,
        out_shape=jax.ShapeDtypeStruct((num_tiles, 1, OUT_LANES), jnp.float32),
        grid=(num_tiles,),
        in_specs=[
            pl.BlockSpec((1, tile_rows, 8), lambda t: (t, 0, 0)),   # packed atoms
            pl.BlockSpec((1, 8, tile_rows), lambda t: (t, 0, 0)),   # packed atoms (T)
            pl.BlockSpec((1, tile_rows, F), lambda t: (t, 0, 0)),   # gathered embeddings
            # weight streams are grid-invariant (constant index_map -> no re-DMA);
            # double-buffering them costs only ~0.2 MiB here, so default pipelining is kept.
            pl.BlockSpec((KPAD, H), lambda t: (0, 0)),
            pl.BlockSpec((1, H), lambda t: (0, 0)),
            pl.BlockSpec((H, H), lambda t: (0, 0)),
            pl.BlockSpec((1, H), lambda t: (0, 0)),
            pl.BlockSpec((1, H), lambda t: (0, 0)),
        ],
        out_specs=pl.BlockSpec((1, 1, OUT_LANES), lambda t: (t, 0, 0)),
        scratch_shapes=[pltpu.VMEM((tile_rows, KPAD), jnp.float32)],
        compiler_params=pltpu.CompilerParams(
            dimension_semantics=("parallel",),
            vmem_limit_bytes=32 * 1024 * 1024),
    )(atom_row, atom_colT, E, w1p, b1, w2b, b2, w3r)

    per_mol = out[:, 0, :b_tile].reshape(bp)[:b]
    # molecule-level bias b3 applied ONCE per molecule + charge term (one FMA each)
    return per_mol + b3[0, 0] + W_Q * charges.astype(jnp.float32)


if __name__ == "__main__":
    key = jax.random.PRNGKey(0)
    kp, ks, kc, kq = jax.random.split(key, 4)

    params = init_params(kp)

    species = jax.random.randint(ks, (B, N), 1, S).astype(jnp.int32)
    species = species.at[1, N - 2:].set(0)          # pad the last 2 atoms of molecule 1
    coords = 2.0 * jax.random.normal(kc, (B, N, 3), jnp.float32)
    charges = jax.random.randint(kq, (B,), -1, 2).astype(jnp.float32)

    energies = nnp_forward(species, coords, charges, params)
    energies = jax.block_until_ready(energies)
    assert energies.shape == (B,) and energies.dtype == jnp.float32
    print("KERNEL_OK")
</pallas_src>

<mosaic_0001>
module attributes {stable_mosaic.version = 11 : i64} {
  func.func @nnp_kernel(%arg0: i32, %arg1: memref<1x8x8xf32, #tpu.memory_space<vmem>>, %arg2: memref<1x8x8xf32, #tpu.memory_space<vmem>>, %arg3: memref<1x8x32xbf16, #tpu.memory_space<vmem>>, %arg4: memref<256x128xbf16, #tpu.memory_space<vmem>>, %arg5: memref<1x128xf32, #tpu.memory_space<vmem>>, %arg6: memref<128x128xbf16, #tpu.memory_space<vmem>>, %arg7: memref<1x128xf32, #tpu.memory_space<vmem>>, %arg8: memref<1x128xf32, #tpu.memory_space<vmem>>, %arg9: memref<1x1x128xf32, #tpu.memory_space<vmem>>, %arg10: memref<8x256xf32, #tpu.memory_space<vmem>>) attributes {dimension_semantics = [#tpu.dimension_semantics<parallel>], iteration_bounds = array<i64: 2>, scalar_prefetch = 0 : i64, scratch_operands = 1 : i64, tpu.core_type = #tpu.core_type<tc>, window_params = [{transform_indices = @transform_0, window_bounds = array<i64: 1, 8, 8>}, {transform_indices = @transform_1, window_bounds = array<i64: 1, 8, 8>}, {transform_indices = @transform_2, window_bounds = array<i64: 1, 8, 32>}, {pipeline_mode = #tpu.pipeline_mode<synchronous>, transform_indices = @transform_3, window_bounds = array<i64: 256, 128>}, {pipeline_mode = #tpu.pipeline_mode<synchronous>, transform_indices = @transform_4, window_bounds = array<i64: 1, 128>}, {pipeline_mode = #tpu.pipeline_mode<synchronous>, transform_indices = @transform_5, window_bounds = array<i64: 128, 128>}, {pipeline_mode = #tpu.pipeline_mode<synchronous>, transform_indices = @transform_6, window_bounds = array<i64: 1, 128>}, {pipeline_mode = #tpu.pipeline_mode<synchronous>, transform_indices = @transform_7, window_bounds = array<i64: 1, 128>}, {transform_indices = @transform_8, window_bounds = array<i64: 1, 1, 128>}]} {
    %c0 = arith.constant 0 : index
    %c0_0 = arith.constant 0 : index
    %c0_1 = arith.constant 0 : index
    %0 = vector.load %arg1[%c0, %c0_0, %c0_1] : memref<1x8x8xf32, #tpu.memory_space<vmem>>, vector<1x8x8xf32>
    %1 = vector.shape_cast %0 : vector<1x8x8xf32> to vector<8x8xf32>
    %c0_2 = arith.constant 0 : index
    %c0_3 = arith.constant 0 : index
    %c0_4 = arith.constant 0 : index
    %2 = vector.load %arg2[%c0_2, %c0_3, %c0_4] : memref<1x8x8xf32, #tpu.memory_space<vmem>>, vector<1x8x8xf32>
    %3 = vector.shape_cast %2 : vector<1x8x8xf32> to vector<8x8xf32>
    %c0_5 = arith.constant 0 : index
    %c0_6 = arith.constant 0 : index
    %c0_7 = arith.constant 0 : index
    %4 = vector.load %arg3[%c0_5, %c0_6, %c0_7] : memref<1x8x32xbf16, #tpu.memory_space<vmem>>, vector<1x8x32xbf16>
    %5 = vector.shape_cast %4 : vector<1x8x32xbf16> to vector<8x32xbf16>
    %6 = vector.extract_strided_slice %1 {offsets = [0, 3], sizes = [8, 1], strides = [1, 1]} : vector<8x8xf32> to vector<8x1xf32>
    %7 = vector.extract_strided_slice %1 {offsets = [0, 4], sizes = [8, 1], strides = [1, 1]} : vector<8x8xf32> to vector<8x1xf32>
    %8 = vector.extract_strided_slice %1 {offsets = [0, 5], sizes = [8, 1], strides = [1, 1]} : vector<8x8xf32> to vector<8x1xf32>
    %9 = vector.extract_strided_slice %1 {offsets = [0, 6], sizes = [8, 1], strides = [1, 1]} : vector<8x8xf32> to vector<8x1xf32>
    %10 = vector.extract_strided_slice %3 {offsets = [5, 0], sizes = [1, 8], strides = [1, 1]} : vector<8x8xf32> to vector<1x8xf32>
    %11 = vector.extract_strided_slice %3 {offsets = [6, 0], sizes = [1, 8], strides = [1, 1]} : vector<8x8xf32> to vector<1x8xf32>
    %12 = vector.extract_strided_slice %1 {offsets = [0, 0], sizes = [8, 1], strides = [1, 1]} : vector<8x8xf32> to vector<8x1xf32>
    %13 = vector.extract_strided_slice %3 {offsets = [0, 0], sizes = [1, 8], strides = [1, 1]} : vector<8x8xf32> to vector<1x8xf32>
    %14 = vector.broadcast %12 : vector<8x1xf32> to vector<8x8xf32>
    %15 = vector.broadcast %13 : vector<1x8xf32> to vector<8x8xf32>
    %16 = arith.subf %14, %15 : vector<8x8xf32>
    %17 = vector.extract_strided_slice %1 {offsets = [0, 1], sizes = [8, 1], strides = [1, 1]} : vector<8x8xf32> to vector<8x1xf32>
    %18 = vector.extract_strided_slice %3 {offsets = [1, 0], sizes = [1, 8], strides = [1, 1]} : vector<8x8xf32> to vector<1x8xf32>
    %19 = vector.broadcast %17 : vector<8x1xf32> to vector<8x8xf32>
    %20 = vector.broadcast %18 : vector<1x8xf32> to vector<8x8xf32>
    %21 = arith.subf %19, %20 : vector<8x8xf32>
    %22 = vector.extract_strided_slice %1 {offsets = [0, 2], sizes = [8, 1], strides = [1, 1]} : vector<8x8xf32> to vector<8x1xf32>
    %23 = vector.extract_strided_slice %3 {offsets = [2, 0], sizes = [1, 8], strides = [1, 1]} : vector<8x8xf32> to vector<1x8xf32>
    %24 = vector.broadcast %22 : vector<8x1xf32> to vector<8x8xf32>
    %25 = vector.broadcast %23 : vector<1x8xf32> to vector<8x8xf32>
    %26 = arith.subf %24, %25 : vector<8x8xf32>
    %27 = arith.mulf %16, %16 : vector<8x8xf32>
    %28 = arith.mulf %21, %21 : vector<8x8xf32>
    %29 = arith.addf %27, %28 : vector<8x8xf32>
    %30 = arith.mulf %26, %26 : vector<8x8xf32>
    %31 = arith.addf %29, %30 : vector<8x8xf32>
    %32 = vector.broadcast %8 : vector<8x1xf32> to vector<8x8xf32>
    %33 = vector.broadcast %10 : vector<1x8xf32> to vector<8x8xf32>
    %34 = arith.cmpf oeq, %32, %33 : vector<8x8xf32>
    %35 = vector.broadcast %9 : vector<8x1xf32> to vector<8x8xf32>
    %36 = vector.broadcast %11 : vector<1x8xf32> to vector<8x8xf32>
    %37 = arith.cmpf one, %35, %36 : vector<8x8xf32>
    %38 = arith.andi %34, %37 : vector<8x8xi1>
    %cst = arith.constant 1.000000e+00 : f32
    %cst_8 = arith.constant 0.000000e+00 : f32
    %39 = vector.broadcast %cst : f32 to vector<8x8xf32>
    %40 = vector.broadcast %cst_8 : f32 to vector<8x8xf32>
    %41 = arith.select %38, %39, %40 : vector<8x8xi1>, vector<8x8xf32>
    %cst_9 = arith.constant -5.000000e-01 : f32
    %42 = vector.broadcast %cst_9 : f32 to vector<8x8xf32>
    %43 = arith.mulf %42, %31 : vector<8x8xf32>
    %44 = math.exp %43 : vector<8x8xf32>
    %45 = arith.mulf %41, %44 : vector<8x8xf32>
    %46 = arith.mulf %45, %45 : vector<8x8xf32>
    %47 = arith.mulf %46, %46 : vector<8x8xf32>
    %48 = arith.mulf %47, %47 : vector<8x8xf32>
    %49 = tpu.concatenate %45, %46, %47, %48 in 0 : vector<8x8xf32>, vector<8x8xf32>, vector<8x8xf32>, vector<8x8xf32> -> vector<32x8xf32>
    %50 = arith.truncf %49 : vector<32x8xf32> to vector<32x8xbf16>
    %cst_10 = arith.constant dense<0.000000e+00> : vector<32x32xf32>
    %51 = tpu.matmul %50, %5, %cst_10 {dimension_numbers = #tpu.dot_dimension_numbers<[1], [0], [0], [1], [0, 0, 1, 1], [], []>} : vector<32x8xbf16>, vector<8x32xbf16>, vector<32x32xf32> -> vector<32x32xf32>
    %cst_11 = arith.constant 0.000000e+00 : f32
    %52 = vector.broadcast %cst_11 : f32 to vector<8x256xf32>
    %c0_12 = arith.constant 0 : index
    %c0_13 = arith.constant 0 : index
    %53 = vector.load %arg10[%c0_12, %c0_13] : memref<8x256xf32, #tpu.memory_space<vmem>>, vector<8x256xf32>
    tpu.vector_store %arg10[%c0_12, %c0_13], %52 {strides = array<i32>} : memref<8x256xf32, #tpu.memory_space<vmem>>, vector<8x256xf32>,
    %54 = arith.extf %5 : vector<8x32xbf16> to vector<8x32xf32>
    %c0_14 = arith.constant 0 : index
    %c0_15 = arith.constant 0 : index
    %55 = vector.load %arg10[%c0_14, %c0_15] : memref<8x256xf32, #tpu.memory_space<vmem>>, vector<8x32xf32>
    tpu.vector_store %arg10[%c0_14, %c0_15], %54 {strides = array<i32>} : memref<8x256xf32, #tpu.memory_space<vmem>>, vector<8x32xf32>,
    %56 = vector.extract_strided_slice %51 {offsets = [0, 0], sizes = [8, 32], strides = [1, 1]} : vector<32x32xf32> to vector<8x32xf32>
    %c0_16 = arith.constant 0 : index
    %c32 = arith.constant 32 : index
    %57 = vector.load %arg10[%c0_16, %c32] : memref<8x256xf32, #tpu.memory_space<vmem>>, vector<8x32xf32>
    tpu.vector_store %arg10[%c0_16, %c32], %56 {strides = array<i32>} : memref<8x256xf32, #tpu.memory_space<vmem>>, vector<8x32xf32>,
    %58 = vector.extract_strided_slice %51 {offsets = [8, 0], sizes = [8, 32], strides = [1, 1]} : vector<32x32xf32> to vector<8x32xf32>
    %c0_17 = arith.constant 0 : index
    %c64 = arith.constant 64 : index
    %59 = vector.load %arg10[%c0_17, %c64] : memref<8x256xf32, #tpu.memory_space<vmem>>, vector<8x32xf32>
    tpu.vector_store %arg10[%c0_17, %c64], %58 {strides = array<i32>} : memref<8x256xf32, #tpu.memory_space<vmem>>, vector<8x32xf32>,
    %60 = vector.extract_strided_slice %51 {offsets = [16, 0], sizes = [8, 32], strides = [1, 1]} : vector<32x32xf32> to vector<8x32xf32>
    %c0_18 = arith.constant 0 : index
    %c96 = arith.constant 96 : index
    %61 = vector.load %arg10[%c0_18, %c96] : memref<8x256xf32, #tpu.memory_space<vmem>>, vector<8x32xf32>
    tpu.vector_store %arg10[%c0_18, %c96], %60 {strides = array<i32>} : memref<8x256xf32, #tpu.memory_space<vmem>>, vector<8x32xf32>,
    %62 = vector.extract_strided_slice %51 {offsets = [24, 0], sizes = [8, 32], strides = [1, 1]} : vector<32x32xf32> to vector<8x32xf32>
    %c0_19 = arith.constant 0 : index
    %c128 = arith.constant 128 : index
    %63 = vector.load %arg10[%c0_19, %c128] : memref<8x256xf32, #tpu.memory_space<vmem>>, vector<8x32xf32>
    tpu.vector_store %arg10[%c0_19, %c128], %62 {strides = array<i32>} : memref<8x256xf32, #tpu.memory_space<vmem>>, vector<8x32xf32>,
    %c0_20 = arith.constant 0 : index
    %c0_21 = arith.constant 0 : index
    %64 = vector.load %arg10[%c0_20, %c0_21] : memref<8x256xf32, #tpu.memory_space<vmem>>, vector<8x256xf32>
    %65 = arith.truncf %64 : vector<8x256xf32> to vector<8x256xbf16>
    %c0_22 = arith.constant 0 : index
    %c0_23 = arith.constant 0 : index
    %66 = vector.load %arg4[%c0_22, %c0_23] : memref<256x128xbf16, #tpu.memory_space<vmem>>, vector<256x128xbf16>
    %cst_24 = arith.constant dense<0.000000e+00> : vector<8x128xf32>
    %67 = tpu.matmul %65, %66, %cst_24 {dimension_numbers = #tpu.dot_dimension_numbers<[1], [0], [0], [1], [0, 0, 1, 1], [], []>} : vector<8x256xbf16>, vector<256x128xbf16>, vector<8x128xf32> -> vector<8x128xf32>
    %c0_25 = arith.constant 0 : index
    %c0_26 = arith.constant 0 : index
    %68 = vector.load %arg5[%c0_25, %c0_26] : memref<1x128xf32, #tpu.memory_space<vmem>>, vector<1x128xf32>
    %69 = vector.broadcast %68 : vector<1x128xf32> to vector<8x128xf32>
    %70 = arith.addf %67, %69 : vector<8x128xf32>
    %71 = math.tanh %70 : vector<8x128xf32>
    %72 = arith.truncf %71 : vector<8x128xf32> to vector<8x128xbf16>
    %c0_27 = arith.constant 0 : index
    %c0_28 = arith.constant 0 : index
    %73 = vector.load %arg6[%c0_27, %c0_28] : memref<128x128xbf16, #tpu.memory_space<vmem>>, vector<128x128xbf16>
    %cst_29 = arith.constant dense<0.000000e+00> : vector<8x128xf32>
    %74 = tpu.matmul %72, %73, %cst_29 {dimension_numbers = #tpu.dot_dimension_numbers<[1], [0], [0], [1], [0, 0, 1, 1], [], []>} : vector<8x128xbf16>, vector<128x128xbf16>, vector<8x128xf32> -> vector<8x128xf32>
    %c0_30 = arith.constant 0 : index
    %c0_31 = arith.constant 0 : index
    %75 = vector.load %arg7[%c0_30, %c0_31] : memref<1x128xf32, #tpu.memory_space<vmem>>, vector<1x128xf32>
    %76 = vector.broadcast %75 : vector<1x128xf32> to vector<8x128xf32>
    %77 = arith.addf %74, %76 : vector<8x128xf32>
    %78 = math.tanh %77 : vector<8x128xf32>
    %c0_32 = arith.constant 0 : index
    %c0_33 = arith.constant 0 : index
    %79 = vector.load %arg8[%c0_32, %c0_33] : memref<1x128xf32, #tpu.memory_space<vmem>>, vector<1x128xf32>
    %80 = vector.broadcast %79 : vector<1x128xf32> to vector<8x128xf32>
    %81 = arith.mulf %78, %80 : vector<8x128xf32>
    %cst_34 = arith.constant dense<0.000000e+00> : vector<8xf32>
    %82 = vector.multi_reduction <add>, %81, %cst_34 [1] : vector<8x128xf32> to vector<8xf32>
    %83 = vector.shape_cast %82 : vector<8xf32> to vector<8x1xf32>
    %84 = arith.addf %83, %7 : vector<8x1xf32>
    %85 = tpu.iota {dimensions = array<i32: 1>} : vector<8x128xi32>
    %86 = arith.sitofp %85 : vector<8x128xi32> to vector<8x128xf32>
    %87 = vector.broadcast %8 : vector<8x1xf32> to vector<8x128xf32>
    %88 = arith.cmpf oeq, %87, %86 : vector<8x128xf32>
    %cst_35 = arith.constant 1.000000e+00 : f32
    %cst_36 = arith.constant 0.000000e+00 : f32
    %89 = vector.broadcast %cst_35 : f32 to vector<8x128xf32>
    %90 = vector.broadcast %cst_36 : f32 to vector<8x128xf32>
    %91 = arith.select %88, %89, %90 : vector<8x128xi1>, vector<8x128xf32>
    %92 = arith.mulf %84, %6 : vector<8x1xf32>
    %93 = vector.broadcast %92 : vector<8x1xf32> to vector<8x128xf32>
    %94 = arith.mulf %93, %91 : vector<8x128xf32>
    %cst_37 = arith.constant dense<0.000000e+00> : vector<128xf32>
    %95 = vector.multi_reduction <add>, %94, %cst_37 [0] : vector<8x128xf32> to vector<128xf32>
    %96 = vector.shape_cast %95 : vector<128xf32> to vector<1x128xf32>
    %c0_38 = arith.constant 0 : index
    %c0_39 = arith.constant 0 : index
    %c0_40 = arith.constant 0 : index
    %97 = vector.load %arg9[%c0_38, %c0_39, %c0_40] : memref<1x1x128xf32, #tpu.memory_space<vmem>>, vector<1x1x128xf32>
    %98 = vector.shape_cast %97 : vector<1x1x128xf32> to vector<1x128xf32>
    %99 = vector.shape_cast %96 : vector<1x128xf32> to vector<1x1x128xf32>
    tpu.vector_store %arg9[%c0_38, %c0_39, %c0_40], %99 {strides = array<i32>} : memref<1x1x128xf32, #tpu.memory_space<vmem>>, vector<1x1x128xf32>,
    return
  }
  func.func @transform_0(%arg0: i32) -> (i32, i32, i32) {
    %c0_i32 = arith.constant 0 : i32
    %c0_i32_0 = arith.constant 0 : i32
    %c0_i32_1 = arith.constant 0 : i32
    return %arg0, %c0_i32, %c0_i32_0 : i32, i32, i32
  }
  func.func @transform_1(%arg0: i32) -> (i32, i32, i32) {
    %c0_i32 = arith.constant 0 : i32
    %c0_i32_0 = arith.constant 0 : i32
    %c0_i32_1 = arith.constant 0 : i32
    return %arg0, %c0_i32, %c0_i32_0 : i32, i32, i32
  }
  func.func @transform_2(%arg0: i32) -> (i32, i32, i32) {
    %c0_i32 = arith.constant 0 : i32
    %c0_i32_0 = arith.constant 0 : i32
    %c0_i32_1 = arith.constant 0 : i32
    return %arg0, %c0_i32, %c0_i32_0 : i32, i32, i32
  }
  func.func @transform_3(%arg0: i32) -> (i32, i32) {
    %c0_i32 = arith.constant 0 : i32
    %c0_i32_0 = arith.constant 0 : i32
    %c0_i32_1 = arith.constant 0 : i32
    return %c0_i32, %c0_i32_0 : i32, i32
  }
  func.func @transform_4(%arg0: i32) -> (i32, i32) {
    %c0_i32 = arith.constant 0 : i32
    %c0_i32_0 = arith.constant 0 : i32
    %c0_i32_1 = arith.constant 0 : i32
    return %c0_i32, %c0_i32_0 : i32, i32
  }
  func.func @transform_5(%arg0: i32) -> (i32, i32) {
    %c0_i32 = arith.constant 0 : i32
    %c0_i32_0 = arith.constant 0 : i32
    %c0_i32_1 = arith.constant 0 : i32
    return %c0_i32, %c0_i32_0 : i32, i32
  }
  func.func @transform_6(%arg0: i32) -> (i32, i32) {
    %c0_i32 = arith.constant 0 : i32
    %c0_i32_0 = arith.constant 0 : i32
    %c0_i32_1 = arith.constant 0 : i32
    return %c0_i32, %c0_i32_0 : i32, i32
  }
  func.func @transform_7(%arg0: i32) -> (i32, i32) {
    %c0_i32 = arith.constant 0 : i32
    %c0_i32_0 = arith.constant 0 : i32
    %c0_i32_1 = arith.constant 0 : i32
    return %c0_i32, %c0_i32_0 : i32, i32
  }
  func.func @transform_8(%arg0: i32) -> (i32, i32, i32) {
    %c0_i32 = arith.constant 0 : i32
    %c0_i32_0 = arith.constant 0 : i32
    %c0_i32_1 = arith.constant 0 : i32
    return %arg0, %c0_i32, %c0_i32_0 : i32, i32, i32
  }
}

</mosaic_0001>

<bundles_post_ra>
// kernel: tpu_custom_call.1
= control target key start
LH: loop header
LB: loop body
LE: loop exit
PB: predicated region body
PF: predicated region fallthrough
CT: control target
= control target key end

     0   :  { %s1911_s0 = inlined_call_operand.hbm [shape: f32[2,8,8], index: 0, kind: input, shape index: {}]   ;;  %s1912_s1 = inlined_call_operand.hbm [shape: f32[2,8,8], index: 1, kind: input, shape index: {}]   ;;  %s1913_s2 = inlined_call_operand.hbm [shape: bf16[2,8,32], index: 2, kind: input, shape index: {}]   ;;  %s1914_s3 = inlined_call_operand.hbm [shape: bf16[256,128], index: 3, kind: input, shape index: {}]   ;;  %s1915_s4 = inlined_call_operand.vmem [shape: f32[1,128], index: 4, kind: input, shape index: {}]   ;;  %s1916_s5 = inlined_call_operand.hbm [shape: bf16[128,128], index: 5, kind: input, shape index: {}]   ;;  %s1917_s6 = inlined_call_operand.vmem [shape: f32[1,128], index: 6, kind: input, shape index: {}]   ;;  %s1918_s7 = inlined_call_operand.vmem [shape: f32[1,128], index: 7, kind: input, shape index: {}]   ;;  %s1919_s8 = inlined_call_operand.hbm [shape: f32[2,1,128], index: 8, kind: output, shape index: {}]  }
   0x1   :  { %1939 = sst [smem:[#allocation21_spill]] %s1912_s1 }
   0x2   :  { %1940 = sst [smem:[#allocation22_spill]] %s1914_s3 }
   0x3   :  { %13 = vsyncpa [#allocation4], 0 }
   0x4   :  { %15 = vsyncpa [#allocation4 + $0x1], 0 }
   0x5   :  { %16 = vsyncpa [#allocation7], 0 }
   0x6   :  { %18 = vsyncpa [#allocation7 + $0x1], 0 }
   0x7   :  { %19 = vsyncpa [#allocation10], 0 }
   0x8   :  { %20 = vsyncpa [#allocation5], 0 }
   0x9   :  { %22 = vsyncpa [#allocation5 + $0x1], 0  ;;  %s1561_s27 = smov 0   ;;  %s1563_s28 = smov 0  }
   0xa   :  { %s1565_s29 = smov 0   ;;  %s1567_s30 = smov 0  }
   0xb LB: > { %1941 = sst [smem:[#allocation17_spill]] %s1490_s29  ;;  %s1582_s9 = sadd.s32 4294967295, %s1494_s30   ;;  %s1494_s30 = sphi %s1567_s30, %s1975_s30   ;;  %s1490_s29 = sphi %s1565_s29, %s1977_s29   ;;  %s1486_s28 = sphi %s1563_s28, %s1979_s28   ;;  %s1482_s27 = sphi %s1561_s27, %s1978_s27  }
   0xc   : > { %s1037_s10 = sadd.s32 4294967294, %s1494_s30   ;;  %p48_p0 = scmp.ne.s32.totalorder %s1486_s28, %s1482_s27 }
   0xd   : > { %p1920_p1 = scmp.eq.s32.totalorder %s1582_s9, 0  ;;  %p235_p3 = scmp.eq.s32.totalorder %s1037_s10, 1 }
   0xe   : > { %p1038_p5 = scmp.ge.s32.totalorder %s1494_s30, 1  ;;  %p242_p7 = scmp.lt.s32.totalorder %s1494_s30, 3 }
   0xf   : > { %p1591_p4 = por %p1920_p1, %p48_p0  ;;  %p1596_p6 = por %p235_p3, %p48_p0 }
  0x10   : > { %p1601_p8 = pnand %p1038_p5, %p242_p7  ;;  %s1496_s14 = smov [#allocation9]  }
  0x11   : > { %s1942_s11 = scalar_select %p1591_p4, 1, 0 }
  0x12   : > { %s1943_s12 = scalar_select %p1596_p6, 1, 0 }
  0x13   : > { %s1945_s13 = scalar_select %p1601_p8, 1, 0 }
  0x14   : > { %1944 = sst [smem:[#allocation18_spill]] %s1943_s12  ;;  %s254_s15 = sshll.u32 %s1496_s14, 4  ;;  %s1605_s15 = int_to_ptr.vmem [resolvable:$true] %s254_s15 }
  0x15   : > { %p1163_p9 = pneg %p1601_p8  ;;  %s1617_s17 = sadd.s32 1, %s1494_s30  }
  0x16   : > { %1947 = sst [smem:[#allocation19_spill]] %s1617_s17  ;;  %s35_s18 = sadd.s32 1, %s1490_s29 }
  0x17   : > { %p1612_p11 = pnand %p1163_p9, %p1920_p1  ;;  %s32_s19 = ssub.s32 %s1494_s30, %s1617_s17 }
  0x18   : > { %s1948_s3 = sld [smem:[#allocation22_spill]] }
  0x19   : > { %s1946_s16 = scalar_select %p1612_p11, 1, 0 }
  0x1a   : > { %p1926_p13 = pneg %p1612_p11 }
  0x1e   : > { %s1274_s22 = scalar_lea.hbm %s1948_s3, 2048 }
  0x1f   : > { %p1275_p12 = scmp.ne.s32.totalorder %s1948_s3, %s1274_s22  ;;  %p1281_p5 = scmp.lt.u32.totalorder %s1274_s22, %s1948_s3 }
  0x21   : > { %p1277_p0 = pnand %p1926_p13, %p1275_p12 }
  0x23   : > { %p1278_p3 = pneg %p1277_p0 }
  0x25   : > { %p1283_p7 = pnand %p1281_p5, %p1278_p3 }
  0x27   : > { %1286 = shalt.err (!%p1283_p7)
}
  0x28   : > { %s1287_s10 = scalar_lea.vmem %s1605_s15, 2048  ;;  %p1295_p2 = scmp.lt.s32.totalorder %s1605_s15, %s1605_s15 }
  0x29   : > { %p1288_p9 = scmp.ne.s32.totalorder %s1605_s15, %s1287_s10  ;;  %p1296_p12 = scmp.lt.s32.totalorder %s1287_s10, %s1287_s10 }
  0x2b   : > { %p1290_p10 = pnand %p1288_p9, %p1926_p13  ;;  %p1297_p0 = por %p1296_p12, %p1295_p2 }
  0x2d   : > { %p1291_p1 = pneg %p1290_p10 }
  0x2f   : > { %p1298_p6 = pnand %p1297_p0, %p1291_p1 }
  0x31   : > { %1301 = shalt.err (!%p1298_p6)
}
  0x32   : > { %s1921_s14 = smov 64   ;;  %s1922_s20 = smov 4  }
  0x33   : > { %1166 = dma.hbm_to_vmem [thread:$0]  (!%p1612_p11), %s1948_s3, 2048, %s1605_s15, [#allocation10], %s1921_s14, %s1921_s14, %s1922_s20  }
  0x34   : > { %p33_p1 = scmp.eq.s32.totalorder %s32_s19, 0  ;;  %p42_p2 = scmp.ne.s32.totalorder %s1490_s29, %s1486_s28 }
  0x35   : > { %p43_p6 = scmp.eq.s32.totalorder %s1494_s30, 0  ;;  %p1186_p10 = scmp.lt.s32.totalorder %s1494_s30, 2 }
  0x36   : > { %s1657_s23 = scalar_select %p33_p1, %s1490_s29, %s35_s18  }
  0x37   : > { %p44_p3 = por %p43_p6, %p42_p2  ;;  %p1950_p5 = scmp.eq.s32.totalorder %s1582_s9, 1 }
  0x38   : > { %1949 = sst [smem:[#allocation20_spill]] %s1657_s23  ;;  %s1666_s25 = sand.u32 1, %s1490_s29  }
  0x39   : > { %p1661_p7 = por %p1950_p5, %p42_p2  ;;  %s1925_s26 = sshll.u32 %s1494_s30, 7 }
  0x3a   : > { %s1924_s10 = sshll.u32 %s1666_s25, 3  ;;  %p1670_p9 = pnand %p1186_p10, %p44_p3 }
  0x3b   : > { %s1951_s24 = scalar_select %p1661_p7, 1, 0 }
  0x3c   : > { %s1952_s15 = scalar_select %p1670_p9, 1, 0 }
  0x3d   : > { %s308_s19 = sand.u32 1, %s1494_s30   ;;  %s1953_s1 = sld [smem:[#allocation21_spill]] }
  0x3e   : > { %s312_s14 = scalar_lea.vmem [#allocation6], %s1924_s10  ;;  %s1686_s3 = scalar_lea.sflag [#allocation7], %s308_s19 }
  0x3f   : > { %s319_s20 = sshll.u32 %s312_s14, 4  ;;  %p1692_p0 = pneg %p1670_p9  ;;  %s1684_s20 = int_to_ptr.vmem [resolvable:$true] %s319_s20 }
  0x41   : > { %s1954_s29 = scalar_select %p1692_p0, 1, 0 }
  0x43   : > { %s1680_s22 = scalar_lea.hbm %s1953_s1, %s1925_s26  ;;  %s1307_s10 = scalar_lea.hbm %s1953_s1, 256 }
  0x44   : > { %s1302_s23 = scalar_lea.hbm %s1680_s22, 128  ;;  %p1308_p6 = scmp.lt.u32.totalorder %s1680_s22, %s1953_s1 }
  0x45   : > { %p1303_p12 = scmp.ne.s32.totalorder %s1680_s22, %s1302_s23  ;;  %p1309_p10 = scmp.lt.u32.totalorder %s1307_s10, %s1302_s23 }
  0x46   : > { %p1311_p5 = scmp.lt.u32.totalorder %s1302_s23, %s1680_s22 }
  0x47   : > { %p1305_p1 = pnand %p1692_p0, %p1303_p12  ;;  %p1310_p3 = por %p1309_p10, %p1308_p6 }
  0x49   : > { %p1306_p2 = pneg %p1305_p1  ;;  %p1312_p13 = por %p1311_p5, %p1310_p3 }
  0x4b   : > { %p1313_p7 = pnand %p1312_p13, %p1306_p2 }
  0x4d   : > { %1316 = shalt.err (!%p1313_p7)
}
  0x4e   : > { %s1317_s19 = scalar_lea.vmem %s1684_s20, 128  ;;  %s1499_s18 = smov [#allocation6]  }
  0x4f   : > { %p1318_p12 = scmp.ne.s32.totalorder %s1684_s20, %s1317_s19  ;;  %s1322_s21 = sshll.u32 %s1499_s18, 4  ;;  %s1323_s21 = int_to_ptr.vmem [resolvable:$false] %s1322_s21 }
  0x50   : > { %s1324_s26 = scalar_lea.vmem %s1323_s21, 256  ;;  %p1325_p8 = scmp.lt.s32.totalorder %s1684_s20, %s1323_s21 }
  0x51   : > { %p1320_p1 = pnand %p1318_p12, %p1692_p0  ;;  %p1326_p11 = scmp.lt.s32.totalorder %s1324_s26, %s1317_s19 }
  0x53   : > { %p1321_p4 = pneg %p1320_p1  ;;  %p1327_p6 = por %p1326_p11, %p1325_p8 }
  0x55   : > { %p1328_p10 = pnand %p1327_p6, %p1321_p4 }
  0x57   : > { %1331 = shalt.err (!%p1328_p10)
}
  0x58   : > { %1176 = dma.hbm_to_vmem [thread:$0]  (!%p1670_p9), %s1680_s22, 128, %s1684_s20, %s1686_s3  }
  0x59   : > { %s1500_s23 = smov [#allocation11]   ;;  %s1332_s18 = scalar_lea.hbm %s1916_s5, 1024 }
  0x5a   : > { %s270_s10 = sshll.u32 %s1500_s23, 4  ;;  %p1333_p8 = scmp.ne.s32.totalorder %s1916_s5, %s1332_s18  ;;  %s271_s10 = int_to_ptr.vmem [resolvable:$true] %s270_s10 }
  0x5b   : > { %p1955_p4 = scmp.ne.s32.totalorder %s1946_s16, 0  ;;  %p1339_p2 = scmp.lt.u32.totalorder %s1332_s18, %s1916_s5 }
  0x5d   : > { %p1956_p11 = pneg %p1955_p4 }
  0x5f   : > { %p1335_p13 = pnand %p1333_p8, %p1956_p11 }
  0x61   : > { %p1336_p7 = pneg %p1335_p13 }
  0x63   : > { %p1341_p3 = pnand %p1339_p2, %p1336_p7 }
  0x65   : > { %1344 = shalt.err (!%p1341_p3)
}
  0x66   : > { %s1345_s20 = scalar_lea.vmem %s271_s10, 1024  ;;  %p1957_p12 = pmov %p1956_p11 }
  0x67   : > { %p1346_p5 = scmp.ne.s32.totalorder %s271_s10, %s1345_s20  ;;  %p1353_p10 = scmp.lt.s32.totalorder %s271_s10, %s271_s10 }
  0x68   : > { %p1354_p9 = scmp.lt.s32.totalorder %s1345_s20, %s1345_s20 }
  0x69   : > { %p1348_p1 = pnand %p1346_p5, %p1957_p12 }
  0x6a   : > { %p1355_p0 = por %p1354_p9, %p1353_p10 }
  0x6b   : > { %p1349_p6 = pneg %p1348_p1 }
  0x6d   : > { %p1356_p8 = pnand %p1355_p0, %p1349_p6 }
  0x6f   : > { %1359 = shalt.err (!%p1356_p8)
}
  0x70   : > { %s1958_s1 = smov 4   ;;  %s1959_s17 = smov 64  }
  0x71   : > { %1169 = dma.hbm_to_vmem [thread:$0]  (!%p1955_p4), %s1916_s5, 1024, %s271_s10, [#allocation10], %s1959_s17, %s1959_s17, %s1958_s1  }
  0x72   : > { %s1960_s14 = sshll.u32 %s1494_s30, 7  ;;  %s1961_s26 = sshll.u32 %s1666_s25, 3 }
  0x73   : > { %s1744_s19 = scalar_lea.hbm %s1911_s0, %s1960_s14  ;;  %s294_s16 = scalar_lea.vmem [#allocation3], %s1961_s26 }
  0x74   : > { %s301_s20 = sshll.u32 %s294_s16, 4  ;;  %s1046_s22 = sshll.u32 %s1666_s25, 2  ;;  %s1748_s20 = int_to_ptr.vmem [resolvable:$true] %s301_s20 }
  0x75   : > { %s291_s23 = scalar_lea.sflag [#allocation4], %s1666_s25  ;;  %s1360_s12 = scalar_lea.hbm %s1744_s19, 128 }
  0x76   : > { %p1361_p9 = scmp.ne.s32.totalorder %s1744_s19, %s1360_s12  ;;  %p1962_p0 = scmp.ne.s32.totalorder %s1954_s29, 0 }
  0x77   : > { %s1365_s17 = scalar_lea.hbm %s1911_s0, 256  ;;  %p1366_p13 = scmp.lt.u32.totalorder %s1744_s19, %s1911_s0 }
  0x78   : > { %p1363_p4 = pnand %p1361_p9, %p1962_p0  ;;  %p1367_p7 = scmp.lt.u32.totalorder %s1365_s17, %s1360_s12 }
  0x79   : > { %p1369_p3 = scmp.lt.u32.totalorder %s1360_s12, %s1744_s19 }
  0x7a   : > { %p1364_p11 = pneg %p1363_p4  ;;  %p1368_p2 = por %p1367_p7, %p1366_p13 }
  0x7c   : > { %p1370_p5 = por %p1369_p3, %p1368_p2 }
  0x7e   : > { %p1371_p12 = pnand %p1370_p5, %p1364_p11 }
  0x80   : > { %1374 = shalt.err (!%p1371_p12)
}
  0x81   : > { %s1375_s21 = scalar_lea.vmem %s1748_s20, 128  ;;  %s1501_s26 = smov [#allocation3]  }
  0x82   : > { %p1376_p1 = scmp.ne.s32.totalorder %s1748_s20, %s1375_s21  ;;  %s1380_s16 = sshll.u32 %s1501_s26, 4  ;;  %s1381_s16 = int_to_ptr.vmem [resolvable:$false] %s1380_s16 }
  0x83   : > { %s1382_s10 = scalar_lea.vmem %s1381_s16, 256  ;;  %p1383_p8 = scmp.lt.s32.totalorder %s1748_s20, %s1381_s16 }
  0x84   : > { %p1378_p6 = pnand %p1376_p1, %p1962_p0  ;;  %p1384_p9 = scmp.lt.s32.totalorder %s1382_s10, %s1375_s21 }
  0x86   : > { %p1379_p10 = pneg %p1378_p6  ;;  %p1385_p4 = por %p1384_p9, %p1383_p8 }
  0x88   : > { %p1386_p13 = pnand %p1385_p4, %p1379_p10 }
  0x8a   : > { %1389 = shalt.err (!%p1386_p13)
}
  0x8b   : > { %p1963_p11 = scmp.ne.s32.totalorder %s1952_s15, 0  ;;  %s1047_s12 = sshll.u32 %s1494_s30, 6 }
  0x8c   : > { %s1777_s14 = scalar_lea.hbm %s1913_s2, %s1047_s12  ;;  %s330_s18 = scalar_lea.vmem [#allocation8], %s1046_s22 }
  0x8d   : > { %1173 = dma.hbm_to_vmem [thread:$0]  (!%p1963_p11), %s1744_s19, 128, %s1748_s20, %s291_s23  }
  0x8e   : > { %s337_s21 = sshll.u32 %s330_s18, 4  ;;  %s1390_s26 = scalar_lea.hbm %s1777_s14, 64  ;;  %s338_s21 = int_to_ptr.vmem [resolvable:$true] %s337_s21 }
  0x8f   : > { %p1391_p7 = scmp.ne.s32.totalorder %s1777_s14, %s1390_s26  ;;  %s1395_s23 = scalar_lea.hbm %s1913_s2, 128 }
  0x90   : > { %p1396_p5 = scmp.lt.u32.totalorder %s1777_s14, %s1913_s2  ;;  %p1397_p12 = scmp.lt.u32.totalorder %s1395_s23, %s1390_s26 }
  0x91   : > { %p1393_p2 = pnand %p1391_p7, %p1962_p0  ;;  %p1399_p6 = scmp.lt.u32.totalorder %s1390_s26, %s1777_s14 }
  0x92   : > { %p1398_p1 = por %p1397_p12, %p1396_p5 }
  0x93   : > { %p1394_p3 = pneg %p1393_p2 }
  0x94   : > { %p1400_p10 = por %p1399_p6, %p1398_p1 }
  0x96   : > { %p1401_p8 = pnand %p1400_p10, %p1394_p3 }
  0x98   : > { %1404 = shalt.err (!%p1401_p8)
}
  0x99   : > { %s1405_s25 = scalar_lea.vmem %s338_s21, 64  ;;  %s1502_s22 = smov [#allocation8]  }
  0x9a   : > { %p1406_p9 = scmp.ne.s32.totalorder %s338_s21, %s1405_s25  ;;  %s1410_s12 = sshll.u32 %s1502_s22, 4  ;;  %s1411_s12 = int_to_ptr.vmem [resolvable:$false] %s1410_s12 }
  0x9b   : > { %s1412_s1 = scalar_lea.vmem %s1411_s12, 128  ;;  %p1413_p7 = scmp.lt.s32.totalorder %s338_s21, %s1411_s12 }
  0x9c   : > { %p1408_p4 = pnand %p1406_p9, %p1962_p0  ;;  %p1414_p2 = scmp.lt.s32.totalorder %s1412_s1, %s1405_s25 }
  0x9e   : > { %p1409_p13 = pneg %p1408_p4  ;;  %p1415_p11 = por %p1414_p2, %p1413_p7 }
  0xa0   : > { %p1416_p5 = pnand %p1415_p11, %p1409_p13 }
  0xa2   : > { %1419 = shalt.err (!%p1416_p5)
}
  0xa3   : > { %p1964_p12 = scmp.ne.s32.totalorder %s1952_s15, 0  ;;  %p1965_p3 = scmp.ne.s32.totalorder %s1945_s13, 0 }
  0xa4   : > { %s1802_s29 = sand.u32 (!%p1965_p3), 1, %s1486_s28   ;;  %p1966_p0 = scmp.ne.s32.totalorder (!%p1965_p3), %s1942_s11, 0 }
  0xa5   : > { %1179 = dma.hbm_to_vmem [thread:$0]  (!%p1964_p12), %s1777_s14, 64, %s338_s21, %s1686_s3  }
  0xa6   : > { %346 = sbr.rel (%p1965_p3) target bundleno = 1449 (0x5a9), region = 52  ;;  %s1049_s17 = sshll.u32 (!%p1965_p3), %s1802_s29, 3 }
  0xa7   : > { %s349_s18 = scalar_lea.sflag (!%p1965_p3), [#allocation4], %s1802_s29  ;;  %s352_s26 = scalar_lea.vmem (!%p1965_p3), [#allocation3], %s1049_s17 }
  0xad   : > { %1465 = dma.done.wait (%p1966_p0), %s349_s18, 128  }
  0xae   : > { %1467 = vsyncadd (%p1966_p0), %s349_s18, 4294967168  ;;  %s357_s3 = sand.u32 1, %s1582_s9   ;;  %s1811_s13 = scalar_lea.vmem [#allocation6], %s1049_s17 }
  0xaf   : > { %s358_s15 = scalar_lea.sflag [#allocation7], %s357_s3 }
  0xb0   : > { %1469 = dma.done.wait (%p1966_p0), %s358_s15, 192  }
  0xb1   : > { %1471 = vsyncadd (%p1966_p0), %s358_s15, 4294967104  ;;  %s1051_s14 = sshll.u32 %s1802_s29, 2  ;;  %p1967_p11 = scmp.eq.s32.totalorder %s1582_s9, 0 }
  0xb2   : > { %s370_s21 = scalar_lea.vmem [#allocation8], %s1051_s14 }
  0xb3   : > { %1473 = dma.done.wait (%p1967_p11), [#allocation10], 3072   ;;  %p1968_p1 = pmov %p1967_p11 }
  0xb4   : > { %v1503_v0 = vmov 0   ;;  %v1504_v1 = vmov 2   ;;  %v1822_v2 = vld [vmem:[%s352_s26] sm:$0xff]  ;;  %v1505_v3 = vmov 1   ;;  %v1506_v4 = vmov 5   ;;  %v422_v13 = vld [vmem:[%s1811_s13] sm:$0xff] }
  0xb5   : > { %1475 = vsyncadd (%p1968_p1), [#allocation10], 4294964224  ;;  %1238 = vset.pattern.permute.xlu0 %v1503_v0  ;;  %1240 = vset.pattern.permute.xlu1 %v1504_v1  ;;  %v1507_v5 = vmov 6   ;;  %v423_v6 = vld [vmem:[%s370_s21] sm:$0xf]  ;;  %vm493_vm0 = vcmask 1043456   ;;  %v429_v9 = vlaneseq }
  0xb6   : > { %426 = vperm.xlu0 %1238, %v1822_v2   ;;  %444 = vperm.xlu1 %1240, %v1822_v2   ;;  %v1508_v7 = vmov 0.0   ;;  %v495_v8 = vsel %vm493_vm0, %v423_v6, 0  ;;  %vm486_vm5 = vcmask 64512   ;;  %v548_v48 = vunpack.c.l.bf16 %v423_v6  ;;  %v1244_v49 = vld [vmem:[#allocation9 + $0x40] sm:$0xff]   ;;  %v1246_v51 = vld [vmem:[#allocation9 + $0x48] sm:$0xff]   ;;  %v1248_v53 = vld [vmem:[#allocation9 + $0x50] sm:$0xff]  }
  0xb7   : > { %546 = vst [vmem:[#allocation2] sm:$0xff] %v1508_v7  ;;  %547 = vst [vmem:[#allocation2 + $0x8] sm:$0xff] %v1508_v7  ;;  %1146 = vmatprep.subr.msk.bf16.mxu0 %vm493_vm0, %v423_v6  ;;  %v430_v10 = vshrl.u32 %v429_v9, 7  ;;  %v875_v15 = vand.u32 127, %v429_v9  ;;  %vm549_vm6 = vcmask 261120   ;;  %v1245_v50 = vld [vmem:[#allocation9] sm:$0xff]   ;;  %1089 = vmatprep.subr.bf16.mxu1 %v1244_v49 }
  0xb8   : > { %1121 = vmatpush3.bf16.msra.mxu0 %v495_v8  ;;  %550 = vst.msk [vmem:[#allocation2] sm:$0xff] %vm549_vm6, %v548_v48  ;;  %1090 = vmatpush3.bf16.msra.mxu1 %v1245_v50  ;;  %v1247_v52 = vld [vmem:[#allocation9 + $0x8] sm:$0xff]   ;;  %v1249_v54 = vld [vmem:[#allocation9 + $0x10] sm:$0xff]   ;;  %v1250_v55 = vld [vmem:[#allocation9 + $0x58] sm:$0xff]   ;;  %s1509_s11 = smov 32   ;;  %s1510_s19 = smov 64  }
  0xb9   : > { %1126 = vmatprep.subr.bf16.mxu0 %v1508_v7  ;;  %v431_v11 = vsub.s32 0, %v430_v10  ;;  %v449_v12 = vsub.s32 2, %v430_v10  ;;  %v440_v14 = vsub.s32 1, %v430_v10  ;;  %v876_v21 = vcvt.s32.f32 %v875_v15  ;;  %1091 = vmatprep.subr.bf16.mxu1 %v1246_v51  ;;  %v1251_v56 = vld [vmem:[#allocation9 + $0x18] sm:$0xff]   ;;  %v1252_v57 = vld [vmem:[#allocation9 + $0x60] sm:$0xff]   ;;  %v1254_v59 = vld [vmem:[#allocation9 + $0x68] sm:$0xff]  }
  0xba   : > { %1239 = vset.pattern.permute.xlu0 %v1505_v3  ;;  %1241 = vset.pattern.permute.xlu1 %v1506_v4  ;;  %v463_v34 = vsub.s32 5, %v430_v10  ;;  %v472_v35 = vsub.s32 6, %v430_v10  ;;  %v1253_v58 = vld [vmem:[#allocation9 + $0x20] sm:$0xff]   ;;  %v1255_v60 = vld [vmem:[#allocation9 + $0x28] sm:$0xff]   ;;  %v1256_v61 = vld [vmem:[#allocation9 + $0x70] sm:$0xff]   ;;  %s1511_s20 = smov 96  }
  0xbb   : > { %435 = vperm.xlu0 %1239, %v1822_v2   ;;  %458 = vperm.xlu1 %1241, %v1822_v2   ;;  %v432_v16 = vrot.slane %v422_v13, %v431_v11  ;;  %v450_v18 = vrot.slane %v422_v13, %v449_v12  ;;  %v441_v20 = vrot.slane %v422_v13, %v440_v14  ;;  %v1257_v62 = vld [vmem:[#allocation9 + $0x30] sm:$0xff]   ;;  %v1258_v63 = vld [vmem:[#allocation9 + $0x78] sm:$0xff]   ;;  %v1260_v6 = vld [vmem:[#allocation11] sm:$0xff]   ;;  %vm555_vm7 = vcmask 523520   ;;  %s1513_s10 = smov 1   ;;  %s1083_s17 = sshll.u32 %s1582_s9, 4 }
  0xbc   : > { %v464_v37 = vrot.slane %v422_v13, %v463_v34  ;;  %v473_v38 = vrot.slane %v422_v13, %v472_v35  ;;  %1092 = vmatpush3.bf16.msra.mxu1 %v1247_v52  ;;  %v1259_v0 = vld [vmem:[#allocation9 + $0x38] sm:$0xff]   ;;  %v1261_v8 = vld [vmem:[#allocation11 + $0x8] sm:$0xff]   ;;  %v1262_v9 = vld [vmem:[#allocation11 + $0x10] sm:$0xff]   ;;  %vm561_vm8 = vcmask 785920   ;;  %vm567_vm9 = vcmask 1048320   ;;  %s419_s18 = scalar_lea.vmem [#allocation12], %s1802_s29  ;;  %s1867_s13 = scalar_lea.hbm %s1919_s8, %s1083_s17 }
  0xbd   : > { %1093 = vmatprep.subr.bf16.mxu1 %v1248_v53  ;;  %vm1512_vm10 = vmmov 0   ;;  %s909_s26 = sshll.u32 %s419_s18, 4  ;;  %s897_s14 = scalar_lea.sflag [#allocation5], %s1802_s29  ;;  %s1869_s26 = int_to_ptr.vmem [resolvable:$true] %s909_s26 }
  0xbe   : > { %s1420_s21 = scalar_lea.vmem %s1869_s26, 16  ;;  %p1971_p10 = scmp.ne.s32.totalorder %s1951_s24, 0 }
  0xbf   : > { %1242 = vset.pattern.permute.xlu1 %v1507_v5  ;;  %p1421_p6 = scmp.ne.s32.totalorder %s1869_s26, %s1420_s21  ;;  %s1515_s9 = smov [#allocation12]  }
  0xc0   : > { %467 = vperm.xlu1 %1242, %v1822_v2   ;;  %1094 = vmatpush3.bf16.msra.mxu1 %v1249_v54 }
  0xc1   : > { %1095 = vmatprep.subr.bf16.mxu1 %v1250_v55  ;;  %p1422_p8 = pnand %p1421_p6, %p1971_p10 }
  0xc3   : > { %p1423_p9 = pneg %p1422_p8 }
  0xc4   : > { %1096 = vmatpush3.bf16.msra.mxu1 %v1251_v56 }
  0xc5   : > { %1097 = vmatprep.subr.bf16.mxu1 %v1252_v57 }
  0xc8   : > { %1098 = vmatpush3.bf16.msra.mxu1 %v1253_v58 }
  0xc9   : > { %1099 = vmatprep.subr.bf16.mxu1 %v1254_v59 }
  0xcc   : > { %1100 = vmatpush3.bf16.msra.mxu1 %v1255_v60 }
  0xcd   : > { %1101 = vmatprep.subr.bf16.mxu1 %v1256_v61 }
  0xd0   : > { %1102 = vmatpush3.bf16.msra.mxu1 %v1257_v62 }
  0xd1   : > { %1103 = vmatprep.subr.bf16.mxu1 %v1258_v63 }
  0xd4   : > { %1104 = vmatpush3.bf16.msra.mxu1 %v1259_v0 }
 0x135   : > { %v427_v17 = vpop.permute.xlu0 %426  ;;  %v445_v19 = vpop.permute.xlu1 %444 }
 0x136   : > { %v433_v22 = vsub.f32 %v427_v17, %v432_v16  ;;  %v451_v23 = vsub.f32 %v445_v19, %v450_v18  ;;  %v1263_v17 = vld [vmem:[#allocation11 + $0x18] sm:$0xff]   ;;  %v1264_v18 = vld [vmem:[#allocation11 + $0x20] sm:$0xff]   ;;  %v1265_v19 = vld [vmem:[#allocation11 + $0x28] sm:$0xff]  }
 0x138   : > { %v452_v28 = vmul.f32 %v433_v22, %v433_v22  ;;  %v455_v30 = vmul.f32 %v451_v23, %v451_v23  ;;  %v1056_v23 = vld [vmem:[%s1915_s4] ss:$0 sm:$0xff] }
 0x13a   : > { %v436_v24 = vpop.permute.xlu0 %435  ;;  %v459_v25 = vpop.permute.xlu1 %458 }
 0x13b   : > { %v442_v26 = vsub.f32 %v436_v24, %v441_v20  ;;  %vm1833_vm1 = vcmp.eq.f32.partialorder %v459_v25, %v876_v21  ;;  %vm465_vm2 = vcmp.eq.f32.partialorder %v459_v25, %v464_v37  ;;  %v1266_v20 = vld [vmem:[#allocation11 + $0x30] sm:$0xff]   ;;  %v1267_v21 = vld [vmem:[#allocation11 + $0x38] sm:$0xff]  }
 0x13d   : > { %v453_v29 = vmul.f32 %v442_v26, %v442_v26 }
 0x13f   : > { %v454_v31 = vadd.f32 %v453_v29, %v452_v28  ;;  %v468_v39 = vpop.permute.xlu1 %467 }
 0x140   : > { %vm474_vm3 = vcmp.ne.f32.partialorder %v468_v39, %v473_v38  ;;  %v1082_v38 = vld [vmem:[%s1918_s7] ss:$0 sm:$0xff] }
 0x141   : > { %v456_v32 = vadd.f32 %v455_v30, %v454_v31  ;;  %vm475_vm4 = vmand %vm465_vm2, %vm474_vm3 }
 0x142   : > { %v476_v41 = vsel %vm475_vm4, 1.0, %v1508_v7 }
 0x143   : > { %v477_v33 = vmul.f32 -0.5, %v456_v32  ;;  %v1073_v32 = vld [vmem:[%s1917_s6] ss:$0 sm:$0xff] }
 0x145   : > { %v478_v36 = vmul.f32 1.442695, %v477_v33 }
 0x147   : > { %1268 = vpow2.f32 %v478_v36 }
 0x151   : > { %v1269_v40 = vpop.eup %1268 }
 0x152   : > { %v480_v42 = vmul.f32 %v1269_v40, %v476_v41  ;;  %v1514_v41 = vmov 4  }
 0x153   : > { %1243 = vset.pattern.permute.xlu0 %v1514_v41 }
 0x154   : > { %v481_v43 = vmul.f32 %v480_v42, %v480_v42 }
 0x156   : > { %v482_v44 = vmul.f32 %v481_v43, %v481_v43  ;;  %v484_v45 = vpack.c.bf16 %v481_v43, %v480_v42 }
 0x158   : > { %v483_v46 = vmul.f32 %v482_v44, %v482_v44  ;;  %1122 = vmatprep.mubr.msk.bf16.mxu0 %vm486_vm5, %v484_v45 }
 0x15a   : > { %v485_v47 = vpack.c.bf16 %v483_v46, %v482_v44  ;;  %v878_v46 = vsel %vm1833_vm1, 1.0, %v1508_v7 }
 0x15c   : > { %1123 = vmatmul.mubr.msk.bf16.vlgmr.msra.gmra.mrb[0].mxu0 %vm486_vm5, %v485_v47 }
 0x15d   : > { %1127 = vmatpush3.bf16.msra.mxu0 %v1260_v6  ;;  %1142 = vmatprep.mubr.msk.bf16.mxu0 %vm1512_vm10, %v1508_v7 }
 0x15e   : > { %1128 = vmatprep.subr.bf16.mxu0 %v1508_v7 }
 0x161   : > { %1129 = vmatpush3.bf16.msra.mxu0 %v1261_v8 }
 0x162   : > { %1130 = vmatprep.subr.bf16.mxu0 %v1508_v7 }
 0x165   : > { %1131 = vmatpush3.bf16.msra.mxu0 %v1262_v9 }
 0x166   : > { %1132 = vmatprep.subr.bf16.mxu0 %v1508_v7 }
 0x169   : > { %1133 = vmatpush3.bf16.msra.mxu0 %v1263_v17 }
 0x16a   : > { %1134 = vmatprep.subr.bf16.mxu0 %v1508_v7 }
 0x16d   : > { %1135 = vmatpush3.bf16.msra.mxu0 %v1264_v18 }
 0x16e   : > { %1136 = vmatprep.subr.bf16.mxu0 %v1508_v7 }
 0x171   : > { %1137 = vmatpush3.bf16.msra.mxu0 %v1265_v19 }
 0x172   : > { %1138 = vmatprep.subr.bf16.mxu0 %v1508_v7 }
 0x175   : > { %1139 = vmatpush3.bf16.msra.mxu0 %v1266_v20 }
 0x176   : > { %1140 = vmatprep.subr.bf16.mxu0 %v1508_v7 }
 0x179   : > { %1141 = vmatpush3.bf16.msra.mxu0 %v1267_v21 }
 0x22f   : > { %v1124_v1 = vpop.f32.mrb[0].mxu0 }
 0x230   : > { %v531_v3 = vpop.f32.mrb[1].mxu0 }
 0x231   : > { %552 = vrot.lane.b32.xlu0 %v531_v3, %s1509_s11  ;;  %v1125_v4 = vpop.f32.mrb[2].mxu0  ;;  %s1424_s11 = sshll.u32 %s1515_s9, 4  ;;  %s1425_s11 = int_to_ptr.vmem [resolvable:$false] %s1424_s11 }
 0x232   : > { %569 = vst.msk [vmem:[#allocation2 + $0x8] sm:$0xff] %vm549_vm6, %v1125_v4  ;;  %v534_v5 = vpop.f32.mrb[3].mxu0  ;;  %p1427_p4 = scmp.lt.s32.totalorder %s1869_s26, %s1425_s11 }
 0x233   : > { %558 = vrot.lane.b32.xlu1 %v534_v5, %s1510_s19  ;;  %s1426_s19 = scalar_lea.vmem %s1425_s11, 32 }
 0x234   : > { %p1428_p13 = scmp.lt.s32.totalorder %s1426_s19, %s1420_s21 }
 0x235   : > { %564 = vrot.lane.b32.xlu0 %v1124_v1, %s1511_s20 }
 0x236   : > { %p1429_p7 = por %p1428_p13, %p1427_p4 }
 0x238   : > { %p1430_p2 = pnand %p1429_p7, %p1423_p9 }
 0x239   : > { %v571_v10 = vld [vmem:[#allocation2 + $0x8] sm:$0xff]  ;;  %879 = vrot.lane.b32.xlu0 %v1822_v2, %s1513_s10 }
 0x23a   : > { %v573_v11 = vpack.c.bf16 %v571_v10, %v571_v10 }
 0x23c   : > { %741 = vmatprep.mubr.bf16.mxu1 %v573_v11 }
 0x2a3   : > { %v553_v12 = vpop.permute.xlu0 %552 }
 0x2a4   : > { %556 = vst.msk [vmem:[#allocation2] sm:$0xff] %vm555_vm7, %v553_v12 }
 0x2a5   : > { %v559_v13 = vpop.permute.xlu1 %558 }
 0x2a6   : > { %562 = vst.msk [vmem:[#allocation2] sm:$0xff] %vm561_vm8, %v559_v13 }
 0x2a7   : > { %v565_v14 = vpop.permute.xlu0 %564 }
 0x2a8   : > { %568 = vst.msk [vmem:[#allocation2] sm:$0xff] %vm567_vm9, %v565_v14 }
 0x2ab   : > { %v880_v43 = vpop.permute.xlu0 %879 }
 0x2af   : > { %v570_v15 = vld [vmem:[#allocation2] sm:$0xff] }
 0x2b0   : > { %v572_v16 = vpack.c.bf16 %v570_v15, %v570_v15 }
 0x2b2   : > { %742 = vmatmul.mubr.bf16.vlgmr.msra.gmra.mrb[0].mxu1 %v572_v16 }
 0x385   : > { %v1105_v22 = vpop.f32.mrb[0].mxu1 }
 0x386   : > { %v1106_v24 = vpop.f32.mrb[1].mxu1 }
 0x387   : > { %v1107_v25 = vadd.f32 %v1106_v24, %v1105_v22  ;;  %v1108_v26 = vpop.f32.mrb[2].mxu1 }
 0x388   : > { %v1109_v28 = vpop.f32.mrb[3].mxu1 }
 0x389   : > { %v744_v29 = vadd.f32 %v1107_v25, %v1056_v23 }
 0x38b   : > { %1270 = vtanh.f32 %v744_v29 }
 0x395   : > { %v1271_v30 = vpop.eup %1270 }
 0x396   : > { %v750_v31 = vpack.c.bf16 %v1271_v30, %v1271_v30 }
 0x398   : > { %1143 = vmatmul.mubr.bf16.vlgmr.msra.gmra.mrb[4].mxu0 %v750_v31 }
 0x46b   : > { %v856_v33 = vpop.f32.mrb[4].mxu0 }
 0x46c   : > { %v857_v34 = vadd.f32 %v1073_v32, %v856_v33  ;;  %v1144_v35 = vpop.f32.mrb[5].mxu0 }
 0x46d   : > { %v859_v36 = vpop.f32.mrb[6].mxu0 }
 0x46e   : > { %1272 = vtanh.f32 %v857_v34  ;;  %v1145_v37 = vpop.f32.mrb[7].mxu0 }
 0x478   : > { %v1273_v39 = vpop.eup %1272 }
 0x479   : > { %v870_v40 = vmul.f32 %v1273_v39, %v1082_v38 }
 0x47b   : > { %871 = vadd.xlane.f32.xlu1 %v870_v40 }
 0x508   : > { %v872_v42 = vpop.xlane.xlu1 %871 }
 0x509   : > { %v873_v44 = vadd.f32 %v872_v42, %v1822_v2 }
 0x50b   : > { %v882_v45 = vmul.f32 %v880_v43, %v873_v44 }
 0x50d   : > { %885 = vperm.xlu0 %1243, %v882_v45  }
 0x58c   : > { %v886_v47 = vpop.permute.xlu0 %885 }
 0x58d   : > { %v888_v48 = vmul.f32 %v886_v47, %v878_v46 }
 0x58f   : > { %v889_v49 = vrot.slane %v888_v48, 4 }
 0x591   : > { %v890_v50 = vadd.f32 %v889_v49, %v888_v48 }
 0x593   : > { %v891_v51 = vrot.slane %v890_v50, 2 }
 0x595   : > { %v892_v52 = vadd.f32 %v891_v51, %v890_v50 }
 0x597   : > { %v893_v53 = vrot.slane %v892_v52, 1 }
 0x599   : > { %v894_v54 = vadd.f32 %v893_v53, %v892_v52 }
 0x59b   : > { %895 = vst [vmem:[%s419_s18] sm:$0x1] %v894_v54 }
 0x59c   : > { %1433 = shalt.err (!%p1430_p2)
}
 0x59d   : > { %s1434_s29 = scalar_lea.hbm %s1867_s13, 16  ;;  %s1438_s16 = scalar_lea.hbm %s1919_s8, 32 }
 0x59e   : > { %p1435_p5 = scmp.ne.s32.totalorder %s1867_s13, %s1434_s29  ;;  %p1439_p0 = scmp.lt.u32.totalorder %s1867_s13, %s1919_s8 }
 0x59f   : > { %p1440_p11 = scmp.lt.u32.totalorder %s1438_s16, %s1434_s29  ;;  %p1442_p6 = scmp.lt.u32.totalorder %s1434_s29, %s1867_s13 }
 0x5a0   : > { %p1436_p12 = pnand %p1435_p5, %p1971_p10 }
 0x5a1   : > { %p1441_p1 = por %p1440_p11, %p1439_p0 }
 0x5a2   : > { %p1437_p3 = pneg %p1436_p12 }
 0x5a3   : > { %p1443_p8 = por %p1442_p6, %p1441_p1 }
 0x5a5   : > { %p1444_p9 = pnand %p1443_p8, %p1437_p3 }
 0x5a7   : > { %1447 = shalt.err (!%p1444_p9)
}
 0x5a8   : > { %1161 = dma.vmem_to_hbm [thread:$0]  (%p1971_p10), %s1869_s26, 16, %s1867_s13, %s897_s14  }
 0x5a9 PF: > { %s1972_s22 = sld [smem:[#allocation18_spill]]  ;;  %s921_s12 = sand.u32 1, %s1482_s27  }
 0x5aa   : > { %p1974_p13 = scmp.ge.s32.totalorder %s1494_s30, 2  ;;  %s922_s1 = scalar_lea.sflag [#allocation5], %s921_s12 }
 0x5af   : > { %p1973_p4 = scmp.ne.s32.totalorder %s1972_s22, 0 }
 0x5b1   : > { %p1181_p7 = pnand %p1974_p13, %p1973_p4 }
 0x5b3   : > { %1477 = dma.done.wait (!%p1181_p7), %s922_s1, 16  }
 0x5b4   : > { %1479 = vsyncadd (!%p1181_p7), %s922_s1, 4294967280  ;;  %s1975_s30 = sld [smem:[#allocation19_spill]]  ;;  %s1976_s17 = sld [smem:[#allocation17_spill]] }
 0x5b5   : > { %s1977_s29 = sld [smem:[#allocation20_spill]]  ;;  %s1978_s27 = smov %s1486_s28 }
 0x5ba   : > { %p25_p2 = scmp.ge.s32.totalorder %s1975_s30, 4   ;;  %s1979_s28 = smov %s1976_s17 }
 0x5bc   :  { %27 = sbr.rel (!%p25_p2) target bundleno = 11 (0xb), region = 129 }
 0x5c3   :  { %926 = vsyncpa [#allocation4], 1 }
 0x5c4   :  { %928 = vsyncpa [#allocation4 + $0x1], 1 }
 0x5c5   :  { %929 = vsyncpa [#allocation7], 1 }
 0x5c6   :  { %931 = vsyncpa [#allocation7 + $0x1], 1 }
 0x5c7   :  { %932 = vsyncpa [#allocation10], 1 }
 0x5c8   :  { %933 = vsyncpa [#allocation5], 1 }
 0x5c9   :  { %935 = vsyncpa [#allocation5 + $0x1], 1 }

</bundles_post_ra>
